<compile_context>
chip_gen: v7x
topology: tpu7x:2x2x1
jax: 0.10.0
libtpu: 0.0.40
codegen_flags: <defaults>
</compile_context>

<pallas_src>
import math

import jax
import jax.numpy as jnp
from jax.experimental import pallas as pl
from jax.experimental.pallas import tpu as pltpu

_DEG2RAD = math.pi / 180.0

_LANE = 128                          # full lane width -> unmasked vst
_MAX_TILE_BYTES = 4 * 1024 * 1024    # 4 MiB block; double-buffered in+out = 16 MiB
_SMALL_FALLBACK_BYTES = 1 << 20      # below ~1 MiB a fused XLA multiply is faster


def _radians_kernel(x_ref, o_ref):
    # x_ref / o_ref: (tile_rows, 128) lane-dense tiles; pure VPU elementwise scale.
    o_ref[...] = (x_ref[...] * _DEG2RAD).astype(o_ref.dtype)


def radians_forward(angles: jnp.ndarray, *, force_kernel: bool = False) -> jnp.ndarray:
    """Degrees -> radians, elementwise, for an arbitrary-shaped parameter."""
    orig_shape = angles.shape
    dtype = angles.dtype
    itemsize = jnp.dtype(dtype).itemsize
    n = int(angles.size)

    if n == 0:
        return angles

    # Small-parameter fallback: launch + layout plumbing dominates below ~1 MiB.
    if not force_kernel and n * itemsize < _SMALL_FALLBACK_BYTES:
        return angles * jnp.asarray(_DEG2RAD, dtype=dtype)

    # dtype-dependent sublane packing: 8 rows/vreg for f32, 16 for bf16, 32 for int8/fp8.
    sublane = max(8, 32 // itemsize)
    pad_unit = sublane * _LANE

    flat = jnp.ravel(angles)
    rem = n % pad_unit
    if rem:
        # Minimal pad: less than one vreg group, only when the size is ragged.
        flat = jnp.pad(flat, (0, pad_unit - rem))
    padded_n = int(flat.size)
    rows = padded_n // _LANE            # multiple of `sublane`

    # Tile sizing: biggest block <= 4 MiB; otherwise split in two so the grid
    # has >=2 steps and both v7x TensorCores get work.
    max_tile_rows = max(
        sublane, (_MAX_TILE_BYTES // (_LANE * itemsize)) // sublane * sublane
    )
    if rows > max_tile_rows:
        tile_rows = max_tile_rows
    else:
        half = -(-rows // 2)
        tile_rows = max(sublane, -(-half // sublane) * sublane)
    grid = pl.cdiv(rows, tile_rows)     # ragged final block handled by Pallas

    x2d = flat.reshape(rows, _LANE)

    out2d = pl.pallas_call(
        _radians_kernel,
        out_shape=jax.ShapeDtypeStruct((rows, _LANE), dtype),
        grid_spec=pltpu.PrefetchScalarGridSpec(
            num_scalar_prefetch=0,
            grid=(grid,),
            in_specs=[pl.BlockSpec((tile_rows, _LANE), lambda i: (i, 0))],
            out_specs=pl.BlockSpec((tile_rows, _LANE), lambda i: (i, 0)),
        ),
        compiler_params=pltpu.CompilerParams(
            dimension_semantics=("parallel",),
            vmem_limit_bytes=32 * 1024 * 1024,  # v5e default is 16 MiB; raise explicitly
        ),
        cost_estimate=pl.CostEstimate(
            flops=n, transcendentals=0, bytes_accessed=2 * n * itemsize
        ),
    )(x2d)

    if rem:
        return out2d.reshape(-1)[:n].reshape(orig_shape)
    return out2d.reshape(orig_shape)


if __name__ == "__main__":
    key = jax.random.PRNGKey(0)
    k1, k2 = jax.random.split(key)

    # Case 1: small ragged parameter (2, 8, 32) = 512 elems -> pad + slice kernel path.
    a1 = jax.random.uniform(k1, (2, 8, 32), dtype=jnp.float32, minval=0.0, maxval=360.0)
    o1 = jax.block_until_ready(radians_forward(a1, force_kernel=True))

    # Case 2: size is an exact multiple of 8*128 (2, 8, 64) -> pad-free kernel path.
    a2 = jax.random.uniform(k2, (2, 8, 64), dtype=jnp.float32, minval=0.0, maxval=360.0)
    o2 = jax.block_until_ready(radians_forward(a2, force_kernel=True))

    # Case 3: auto path (small-parameter XLA fallback).
    o3 = jax.block_until_ready(radians_forward(a1))

    for a, o in ((a1, o1), (a2, o2), (a1, o3)):
        ref = a * (math.pi / 180.0)
        assert o.shape == a.shape
        assert o.dtype == a.dtype
        assert jnp.allclose(o, ref, atol=1e-6, rtol=1e-6)

    print("KERNEL_OK")
</pallas_src>

<mosaic_0001>
module attributes {stable_mosaic.version = 11 : i64} {
  func.func @_radians_kernel(%arg0: i32, %arg1: memref<8x128xf32, #tpu.memory_space<vmem>>, %arg2: memref<8x128xf32, #tpu.memory_space<vmem>>) attributes {dimension_semantics = [#tpu.dimension_semantics<parallel>], iteration_bounds = array<i64: 1>, scalar_prefetch = 0 : i64, scratch_operands = 0 : i64, tpu.core_type = #tpu.core_type<tc>, window_params = [{transform_indices = @transform_0, window_bounds = array<i64: 8, 128>}, {transform_indices = @transform_1, window_bounds = array<i64: 8, 128>}]} {
    %c0 = arith.constant 0 : index
    %c0_0 = arith.constant 0 : index
    %0 = vector.load %arg1[%c0, %c0_0] : memref<8x128xf32, #tpu.memory_space<vmem>>, vector<8x128xf32>
    %cst = arith.constant 0.0174532924 : f32
    %1 = vector.broadcast %cst : f32 to vector<8x128xf32>
    %2 = arith.mulf %0, %1 : vector<8x128xf32>
    %c0_1 = arith.constant 0 : index
    %c0_2 = arith.constant 0 : index
    %3 = vector.load %arg2[%c0_1, %c0_2] : memref<8x128xf32, #tpu.memory_space<vmem>>, vector<8x128xf32>
    tpu.vector_store %arg2[%c0_1, %c0_2], %2 {strides = array<i32>} : memref<8x128xf32, #tpu.memory_space<vmem>>, vector<8x128xf32>,
    return
  }
  func.func @transform_0(%arg0: i32) -> (i32, i32) {
    %c0_i32 = arith.constant 0 : i32
    %c0_i32_0 = arith.constant 0 : i32
    return %arg0, %c0_i32 : i32, i32
  }
  func.func @transform_1(%arg0: i32) -> (i32, i32) {
    %c0_i32 = arith.constant 0 : i32
    %c0_i32_0 = arith.constant 0 : i32
    return %arg0, %c0_i32 : i32, i32
  }
}

</mosaic_0001>

<bundles_post_ra>
// kernel: tpu_custom_call.1
= control target key start
LH: loop header
LB: loop body
LE: loop exit
PB: predicated region body
PF: predicated region fallthrough
CT: control target
= control target key end

     0   :  { %6 = vsyncpa [#allocation3], 0  ;;  %s125_s0 = inlined_call_operand.hbm [shape: f32[8,128], index: 0, kind: input, shape index: {}]   ;;  %s126_s1 = inlined_call_operand.hbm [shape: f32[8,128], index: 1, kind: output, shape index: {}]  }
   0x1   :  { %7 = vsyncpa [#allocation4], 0  ;;  %s89_s6 = smov [#allocation2]   ;;  %s41_s10 = scalar_lea.hbm %s125_s0, 128 }
   0x2   :  { %s14_s7 = sshll.u32 %s89_s6, 4  ;;  %p42_p0 = scmp.ne.s32.totalorder %s125_s0, %s41_s10  ;;  %s15_s7 = int_to_ptr.vmem [resolvable:$true] %s14_s7 }
   0x3   :  { %p45_p1 = scmp.lt.u32.totalorder %s41_s10, %s125_s0 }
   0x5   :  { %p47_p2 = pnand %p45_p1, %p42_p0 }
   0x7   :  { %50 = shalt.err (!%p47_p2)
}
   0x8   :  { %s51_s15 = scalar_lea.vmem %s15_s7, 128  ;;  %p56_p4 = scmp.lt.s32.totalorder %s15_s7, %s15_s7 }
   0x9   :  { %p52_p3 = scmp.ne.s32.totalorder %s15_s7, %s51_s15  ;;  %p57_p5 = scmp.lt.s32.totalorder %s51_s15, %s51_s15 }
   0xb   :  { %p58_p6 = por %p57_p5, %p56_p4 }
   0xd   :  { %p59_p7 = pnand %p58_p6, %p52_p3 }
   0xf   :  { %62 = shalt.err (!%p59_p7)
}
  0x10   :  { %17 = dma.hbm_to_vmem [thread:$0]  %s125_s0, 128, %s15_s7, [#allocation3]  }
  0x11   :  { %85 = dma.done.wait [#allocation3], 128  }
  0x12   :  { %86 = vsyncadd [#allocation3], 4294967168  ;;  %s90_s18 = smov [#allocation5]   ;;  %v21_v0 = vld [vmem:[#allocation2] sm:$0xff] }
  0x13   :  { %s30_s19 = sshll.u32 %s90_s18, 4  ;;  %v22_v1 = vmul.f32 0.017453292, %v21_v0  ;;  %s31_s19 = int_to_ptr.vmem [resolvable:$true] %s30_s19 }
  0x14   :  { %s63_s20 = scalar_lea.vmem %s31_s19, 128  ;;  %p68_p9 = scmp.lt.s32.totalorder %s31_s19, %s31_s19 }
  0x15   :  { %23 = vst [vmem:[#allocation5] sm:$0xff] %v22_v1  ;;  %p64_p8 = scmp.ne.s32.totalorder %s31_s19, %s63_s20  ;;  %p69_p10 = scmp.lt.s32.totalorder %s63_s20, %s63_s20 }
  0x17   :  { %p70_p11 = por %p69_p10, %p68_p9 }
  0x19   :  { %p71_p12 = pnand %p70_p11, %p64_p8 }
  0x1b   :  { %74 = shalt.err (!%p71_p12)
}
  0x1c   :  { %s75_s23 = scalar_lea.hbm %s126_s1, 128 }
  0x1d   :  { %p76_p13 = scmp.ne.s32.totalorder %s126_s1, %s75_s23  ;;  %p79_p0 = scmp.lt.u32.totalorder %s75_s23, %s126_s1 }
  0x1f   :  { %p81_p1 = pnand %p79_p0, %p76_p13 }
  0x21   :  { %84 = shalt.err (!%p81_p1)
}
  0x22   :  { %33 = dma.vmem_to_hbm [thread:$0]  %s31_s19, 128, %s126_s1, [#allocation4]  }
  0x23   :  { %87 = dma.done.wait [#allocation4], 128  }
  0x24   :  { %88 = vsyncadd [#allocation4], 4294967168 }
  0x25   :  { %37 = vsyncpa [#allocation3], 1 }
  0x26   :  { %38 = vsyncpa [#allocation4], 1 }

</bundles_post_ra>
